<compile_context>
chip_gen: v5e
topology: v5e:2x2
jax: 0.10.0
libtpu: 0.0.40
codegen_flags: <defaults>
</compile_context>

<pallas_src>
import jax
import jax.numpy as jnp
from jax.experimental import pallas as pl
from jax.experimental.pallas import tpu as pltpu

H1 = 400          # fc1 output dim (PyTorch)
H2 = 300          # fc2 output dim (PyTorch)
H1P = 512         # padded to a multiple of 128 lanes
H2P = 384         # padded to a multiple of 128 lanes


def _round_up(x, m):
    return pl.cdiv(x, m) * m


def value_fn_kernel(x_ref, w1_ref, w2x_ref, w2a_ref, w3_ref, b3_ref, out_ref):
    bf = jnp.bfloat16
    x = x_ref[...]                                    # (tb, K) bf16 = [s | a | 1]

    # fc1 (b1 folded into the ones-column row of W1); relu in bf16
    h1 = jnp.dot(x, w1_ref[...], preferred_element_type=jnp.float32)
    h1 = jnp.maximum(h1.astype(bf), 0)                # bf16 epilogue, exact relu

    # fc2 over concat([h1, a]) as split-weight matmuls; b2 folded into the
    # ones-column row of the action-side weight.
    h2 = (jnp.dot(h1, w2x_ref[...], preferred_element_type=jnp.float32)
          + jnp.dot(x, w2a_ref[...], preferred_element_type=jnp.float32))
    h2 = jnp.maximum(h2.astype(bf), 0)                # bf16 epilogue

    # fc3 on the MXU: (tb, H2P) @ (H2P, 128) bf16, q lives in lane 0
    q = jnp.dot(h2, w3_ref[...], preferred_element_type=jnp.float32)
    out_ref[...] = q[:, :1] + b3_ref[...]


def prepare_params(params, obs_dim, action_dim):
    """One-time padding / bf16 cast / bias folding (hoisted out of the call path)."""
    w1, b1, w2, b2, w3, b3 = params
    bf = jnp.bfloat16
    K = obs_dim + action_dim + 1                      # merged input: [s | a | 1]

    # fc1: action rows are zero, the ones-column row carries b1
    w1f = jnp.zeros((K, H1P), bf)
    w1f = w1f.at[:obs_dim, :H1].set(w1.astype(bf))
    w1f = w1f.at[K - 1, :H1].set(b1.astype(bf))

    # fc2 split: h1 rows (padded) and merged-input rows (action block + b2 row)
    w2xf = jnp.zeros((H1P, H2P), bf).at[:H1, :H2].set(w2[:H1].astype(bf))
    w2af = jnp.zeros((K, H2P), bf)
    w2af = w2af.at[obs_dim:obs_dim + action_dim, :H2].set(w2[H1:].astype(bf))
    w2af = w2af.at[K - 1, :H2].set(b2.astype(bf))

    # fc3 routed through the MXU: (H2P, 128) bf16 with q in lane 0
    w3f = jnp.zeros((H2P, 128), bf).at[:H2, 0].set(w3[:, 0].astype(bf))
    b3f = jnp.asarray(b3, jnp.float32).reshape(1, 1)
    return (w1f, w2xf, w2af, w3f, b3f)


def value_function_pallas(s, a, padded_params, *, tb_max=2048):
    """s: [B, obs_dim] f32, a: [B, action_dim] f32  ->  [B, 1] f32."""
    B, obs_dim = s.shape
    action_dim = a.shape[1]
    w1f, w2xf, w2af, w3f, b3f = padded_params
    K = w1f.shape[0]
    assert K == obs_dim + action_dim + 1

    # Batch tile: aim for >=4 grid steps (megacore + pipelining) at 256-row
    # granularity (MXU row pass, multiple of 128 for v5e, 16 for bf16 packing);
    # tiny batches collapse to one 16-row-aligned tile.
    tb = int(_round_up(pl.cdiv(B, 4), 256))
    tb = min(tb, int(tb_max))
    if B < tb:
        tb = int(max(16, _round_up(B, 16)))
    b_pad = int(_round_up(B, tb))

    # Merged streamed input [s | a | 1] in bf16, batch zero-padded (padded rows
    # have a zero ones-column -> h1 = h2 = 0 -> finite q, sliced off below).
    x = jnp.zeros((b_pad, K), jnp.bfloat16)
    x = x.at[:B, :obs_dim].set(s.astype(jnp.bfloat16))
    x = x.at[:B, obs_dim:obs_dim + action_dim].set(a.astype(jnp.bfloat16))
    x = x.at[:B, K - 1].set(jnp.bfloat16(1.0))

    def resident(shape):
        # full-array block, constant block index => stays in VMEM, no re-DMA
        # (pipeline_mode=pl.Buffered(1) would halve the weight buffers; left at
        #  default since VMEM has ample headroom at these sizes)
        return pl.BlockSpec(shape, lambda i: (0,) * len(shape))

    out = pl.pallas_call(
        value_fn_kernel,
        out_shape=jax.ShapeDtypeStruct((b_pad, 1), jnp.float32),
        grid=(b_pad // tb,),
        in_specs=[
            pl.BlockSpec((tb, K), lambda i: (i, 0)),    # streamed [s|a|1] tile
            resident((K, H1P)),                         # W1  (with b1 row)
            resident((H1P, H2P)),                       # W2  (h1 rows)
            resident((K, H2P)),                         # W2  (action rows + b2 row)
            resident((H2P, 128)),                       # W3  (q in lane 0)
            resident((1, 1)),                           # b3
        ],
        out_specs=pl.BlockSpec((tb, 1), lambda i: (i, 0)),
        compiler_params=pltpu.CompilerParams(
            dimension_semantics=("parallel",),
            vmem_limit_bytes=48 * 1024 * 1024,
        ),
    )(x, w1f, w2xf, w2af, w3f, b3f)
    return out[:B]


def init_params(key, obs_dim, action_dim):
    """Deterministic init mirroring nn.Linear's U(-1/sqrt(fan_in), 1/sqrt(fan_in))."""
    def linear(key, fan_in, fan_out):
        kw, kb = jax.random.split(key)
        bound = 1.0 / jnp.sqrt(fan_in)
        # stored as [in, out] (transpose of PyTorch's [out, in])
        w = jax.random.uniform(kw, (fan_in, fan_out), jnp.float32, -bound, bound)
        b = jax.random.uniform(kb, (fan_out,), jnp.float32, -bound, bound)
        return w, b

    k1, k2, k3 = jax.random.split(key, 3)
    w1, b1 = linear(k1, obs_dim, H1)
    w2, b2 = linear(k2, H1 + action_dim, H2)
    w3, b3 = linear(k3, H2, 1)
    return (w1, b1, w2, b2, w3, b3)


def value_function_ref_f32(s, a, params):
    """Pure-JAX f32 reference of the PyTorch forward (semantics check)."""
    w1, b1, w2, b2, w3, b3 = params
    x = jax.nn.relu(s @ w1 + b1)
    x = jax.nn.relu(jnp.concatenate([x, a], axis=1) @ w2 + b2)
    return x @ w3 + b3


def value_function_ref_mixed(s, a, params):
    """Pure-JAX reference with the kernel's bf16/f32 mixed precision."""
    w1, b1, w2, b2, w3, b3 = params
    bf = jnp.bfloat16
    h1 = (jnp.dot(s.astype(bf), w1.astype(bf), preferred_element_type=jnp.float32)
          + b1.astype(bf).astype(jnp.float32))
    h1 = jnp.maximum(h1.astype(bf), 0)
    h2 = (jnp.dot(h1, w2[:H1].astype(bf), preferred_element_type=jnp.float32)
          + jnp.dot(a.astype(bf), w2[H1:].astype(bf),
                    preferred_element_type=jnp.float32)
          + b2.astype(bf).astype(jnp.float32))
    h2 = jnp.maximum(h2.astype(bf), 0)
    q = jnp.dot(h2, w3.astype(bf), preferred_element_type=jnp.float32)
    return q + jnp.asarray(b3, jnp.float32)


if __name__ == "__main__":
    obs_dim, action_dim, batch = 16, 4, 2
    key = jax.random.PRNGKey(0)
    k_s, k_a, k_p = jax.random.split(key, 3)

    s = jax.random.normal(k_s, (batch, obs_dim), jnp.float32)
    a = jax.random.normal(k_a, (batch, action_dim), jnp.float32)
    params = init_params(k_p, obs_dim, action_dim)

    # one-time parameter padding / bias folding (hoisted out of the call path)
    padded = prepare_params(params, obs_dim, action_dim)
    value_fn = jax.jit(value_function_pallas, static_argnames=("tb_max",))

    out = jax.block_until_ready(value_fn(s, a, padded))
    assert out.shape == (batch, 1)

    # bitwise-comparable mixed-precision reference
    ref_mixed = value_function_ref_mixed(s, a, params)
    assert jnp.allclose(out, ref_mixed, atol=5e-3, rtol=5e-3)
    # full-f32 reference (looser: bf16 weight/activation/bias rounding)
    ref_f32 = value_function_ref_f32(s, a, params)
    assert jnp.allclose(out, ref_f32, atol=5e-2, rtol=5e-2)

    # exercise a multi-step grid with a non-multiple-of-tile batch
    b2_ = 1030
    s2 = jax.random.normal(jax.random.PRNGKey(1), (b2_, obs_dim), jnp.float32)
    a2 = jax.random.normal(jax.random.PRNGKey(2), (b2_, action_dim), jnp.float32)
    out2 = jax.block_until_ready(value_fn(s2, a2, padded))            # tb=512, 3 steps
    assert out2.shape == (b2_, 1)
    assert jnp.allclose(out2, value_function_ref_mixed(s2, a2, params),
                        atol=5e-3, rtol=5e-3)

    out3 = jax.block_until_ready(value_fn(s2, a2, padded, tb_max=256))  # tb=256, 5 steps
    assert jnp.allclose(out3, value_function_ref_mixed(s2, a2, params),
                        atol=5e-3, rtol=5e-3)

    print("KERNEL_OK")
</pallas_src>

<mosaic_0001>
module attributes {stable_mosaic.version = 11 : i64} {
  func.func @value_fn_kernel(%arg0: i32, %arg1: memref<16x21xbf16, #tpu.memory_space<vmem>>, %arg2: memref<21x512xbf16, #tpu.memory_space<vmem>>, %arg3: memref<512x384xbf16, #tpu.memory_space<vmem>>, %arg4: memref<21x384xbf16, #tpu.memory_space<vmem>>, %arg5: memref<384x128xbf16, #tpu.memory_space<vmem>>, %arg6: memref<1x1xf32, #tpu.memory_space<vmem>>, %arg7: memref<16x1xf32, #tpu.memory_space<vmem>>) attributes {dimension_semantics = [#tpu.dimension_semantics<parallel>], iteration_bounds = array<i64: 1>, scalar_prefetch = 0 : i64, scratch_operands = 0 : i64, tpu.core_type = #tpu.core_type<tc>, window_params = [{transform_indices = @transform_0, window_bounds = array<i64: 16, 21>}, {pipeline_mode = #tpu.pipeline_mode<synchronous>, transform_indices = @transform_1, window_bounds = array<i64: 21, 512>}, {pipeline_mode = #tpu.pipeline_mode<synchronous>, transform_indices = @transform_2, window_bounds = array<i64: 512, 384>}, {pipeline_mode = #tpu.pipeline_mode<synchronous>, transform_indices = @transform_3, window_bounds = array<i64: 21, 384>}, {pipeline_mode = #tpu.pipeline_mode<synchronous>, transform_indices = @transform_4, window_bounds = array<i64: 384, 128>}, {pipeline_mode = #tpu.pipeline_mode<synchronous>, transform_indices = @transform_5, window_bounds = array<i64: 1, 1>}, {transform_indices = @transform_6, window_bounds = array<i64: 16, 1>}]} {
    %c0 = arith.constant 0 : index
    %c0_0 = arith.constant 0 : index
    %0 = vector.load %arg1[%c0, %c0_0] : memref<16x21xbf16, #tpu.memory_space<vmem>>, vector<16x21xbf16>
    %c0_1 = arith.constant 0 : index
    %c0_2 = arith.constant 0 : index
    %1 = vector.load %arg2[%c0_1, %c0_2] : memref<21x512xbf16, #tpu.memory_space<vmem>>, vector<21x512xbf16>
    %cst = arith.constant dense<0.000000e+00> : vector<16x512xf32>
    %2 = tpu.matmul %0, %1, %cst {dimension_numbers = #tpu.dot_dimension_numbers<[1], [0], [0], [1], [0, 0, 1, 1], [], []>} : vector<16x21xbf16>, vector<21x512xbf16>, vector<16x512xf32> -> vector<16x512xf32>
    %3 = arith.truncf %2 : vector<16x512xf32> to vector<16x512xbf16>
    %cst_3 = arith.constant 0.000000e+00 : bf16
    %4 = vector.broadcast %cst_3 : bf16 to vector<16x512xbf16>
    %5 = arith.maximumf %3, %4 : vector<16x512xbf16>
    %c0_4 = arith.constant 0 : index
    %c0_5 = arith.constant 0 : index
    %6 = vector.load %arg3[%c0_4, %c0_5] : memref<512x384xbf16, #tpu.memory_space<vmem>>, vector<512x384xbf16>
    %cst_6 = arith.constant dense<0.000000e+00> : vector<16x384xf32>
    %7 = tpu.matmul %5, %6, %cst_6 {dimension_numbers = #tpu.dot_dimension_numbers<[1], [0], [0], [1], [0, 0, 1, 1], [], []>} : vector<16x512xbf16>, vector<512x384xbf16>, vector<16x384xf32> -> vector<16x384xf32>
    %c0_7 = arith.constant 0 : index
    %c0_8 = arith.constant 0 : index
    %8 = vector.load %arg4[%c0_7, %c0_8] : memref<21x384xbf16, #tpu.memory_space<vmem>>, vector<21x384xbf16>
    %cst_9 = arith.constant dense<0.000000e+00> : vector<16x384xf32>
    %9 = tpu.matmul %0, %8, %cst_9 {dimension_numbers = #tpu.dot_dimension_numbers<[1], [0], [0], [1], [0, 0, 1, 1], [], []>} : vector<16x21xbf16>, vector<21x384xbf16>, vector<16x384xf32> -> vector<16x384xf32>
    %10 = arith.addf %7, %9 : vector<16x384xf32>
    %11 = arith.truncf %10 : vector<16x384xf32> to vector<16x384xbf16>
    %cst_10 = arith.constant 0.000000e+00 : bf16
    %12 = vector.broadcast %cst_10 : bf16 to vector<16x384xbf16>
    %13 = arith.maximumf %11, %12 : vector<16x384xbf16>
    %c0_11 = arith.constant 0 : index
    %c0_12 = arith.constant 0 : index
    %14 = vector.load %arg5[%c0_11, %c0_12] : memref<384x128xbf16, #tpu.memory_space<vmem>>, vector<384x128xbf16>
    %cst_13 = arith.constant dense<0.000000e+00> : vector<16x128xf32>
    %15 = tpu.matmul %13, %14, %cst_13 {dimension_numbers = #tpu.dot_dimension_numbers<[1], [0], [0], [1], [0, 0, 1, 1], [], []>} : vector<16x384xbf16>, vector<384x128xbf16>, vector<16x128xf32> -> vector<16x128xf32>
    %16 = vector.extract_strided_slice %15 {offsets = [0, 0], sizes = [16, 1], strides = [1, 1]} : vector<16x128xf32> to vector<16x1xf32>
    %c0_14 = arith.constant 0 : index
    %c0_15 = arith.constant 0 : index
    %17 = vector.load %arg6[%c0_14, %c0_15] : memref<1x1xf32, #tpu.memory_space<vmem>>, vector<1x1xf32>
    %18 = vector.broadcast %17 : vector<1x1xf32> to vector<16x1xf32>
    %19 = arith.addf %16, %18 : vector<16x1xf32>
    %c0_16 = arith.constant 0 : index
    %c0_17 = arith.constant 0 : index
    %20 = vector.load %arg7[%c0_16, %c0_17] : memref<16x1xf32, #tpu.memory_space<vmem>>, vector<16x1xf32>
    tpu.vector_store %arg7[%c0_16, %c0_17], %19 {strides = array<i32>} : memref<16x1xf32, #tpu.memory_space<vmem>>, vector<16x1xf32>,
    return
  }
  func.func @transform_0(%arg0: i32) -> (i32, i32) {
    %c0_i32 = arith.constant 0 : i32
    %c0_i32_0 = arith.constant 0 : i32
    return %arg0, %c0_i32 : i32, i32
  }
  func.func @transform_1(%arg0: i32) -> (i32, i32) {
    %c0_i32 = arith.constant 0 : i32
    %c0_i32_0 = arith.constant 0 : i32
    %c0_i32_1 = arith.constant 0 : i32
    return %c0_i32, %c0_i32_0 : i32, i32
  }
  func.func @transform_2(%arg0: i32) -> (i32, i32) {
    %c0_i32 = arith.constant 0 : i32
    %c0_i32_0 = arith.constant 0 : i32
    %c0_i32_1 = arith.constant 0 : i32
    return %c0_i32, %c0_i32_0 : i32, i32
  }
  func.func @transform_3(%arg0: i32) -> (i32, i32) {
    %c0_i32 = arith.constant 0 : i32
    %c0_i32_0 = arith.constant 0 : i32
    %c0_i32_1 = arith.constant 0 : i32
    return %c0_i32, %c0_i32_0 : i32, i32
  }
  func.func @transform_4(%arg0: i32) -> (i32, i32) {
    %c0_i32 = arith.constant 0 : i32
    %c0_i32_0 = arith.constant 0 : i32
    %c0_i32_1 = arith.constant 0 : i32
    return %c0_i32, %c0_i32_0 : i32, i32
  }
  func.func @transform_5(%arg0: i32) -> (i32, i32) {
    %c0_i32 = arith.constant 0 : i32
    %c0_i32_0 = arith.constant 0 : i32
    %c0_i32_1 = arith.constant 0 : i32
    return %c0_i32, %c0_i32_0 : i32, i32
  }
  func.func @transform_6(%arg0: i32) -> (i32, i32) {
    %c0_i32 = arith.constant 0 : i32
    %c0_i32_0 = arith.constant 0 : i32
    return %arg0, %c0_i32 : i32, i32
  }
}

</mosaic_0001>

<bundles_post_ra>
// kernel: value_function_pallas.1
= control target key start
LH: loop header
LB: loop body
LE: loop exit
PB: predicated region body
PF: predicated region fallthrough
CT: control target
= control target key end

     0   :  { %s2272_s0 = inlined_call_operand.vmem [shape: bf16[16,21], index: 0, kind: input, shape index: {}]   ;;  %s2273_s1 = inlined_call_operand.hbm [shape: bf16[21,512], index: 1, kind: input, shape index: {}]   ;;  %s2274_s2 = inlined_call_operand.hbm [shape: bf16[512,384], index: 2, kind: input, shape index: {}]   ;;  %s2275_s3 = inlined_call_operand.hbm [shape: bf16[21,384], index: 3, kind: input, shape index: {}]   ;;  %s2276_s4 = inlined_call_operand.hbm [shape: bf16[384,128], index: 4, kind: input, shape index: {}]   ;;  %s2277_s5 = inlined_call_operand.<no memory space> [shape: f32[1,1], index: 5, kind: input, shape index: {}]   ;;  %s2278_s6 = inlined_call_operand.vmem [shape: f32[16,1], index: 6, kind: output, shape index: {}]  }
   0x1   :  { %v11_v0 = vstv %s2277_s5 }
   0x2   :  { %12 = vst [vmem:[#allocation2] sm:$0x1] %v11_v0 }
   0x3   :  { %13 = vsyncpa [#allocation4], 0 }
   0x4   :  { %14 = vsyncpa [#allocation6], 0  ;;  %s35_s25 = sshll.u32 %s2274_s2, 4  ;;  %s36_s25 = int_to_ptr.hbm [resolvable:$true] %s35_s25 }
   0x5   :  { %15 = vsyncpa [#allocation9], 0  ;;  %s2151_s26 = smov [#allocation5]   ;;  %s22_s30 = sshll.u32 %s2273_s1, 4  ;;  %s23_s30 = int_to_ptr.hbm [resolvable:$true] %s22_s30 }
   0x6   :  { %s37_s27 = sshll.u32 %s2151_s26, 4  ;;  %s2152_s7 = smov 192   ;;  %s38_s27 = int_to_ptr.vmem [resolvable:$true] %s37_s27 }
   0x7   :  { %s2153_s8 = smov 12   ;;  %s2154_s5 = smov [#allocation3]  }
   0x8   :  { %43 = dma.hbm_to_vmem [thread:$0]  %s36_s25, 12288, %s38_s27, [#allocation6], %s2152_s7, %s2152_s7, %s2153_s8  }
   0x9   :  { %s24_s9 = sshll.u32 %s2154_s5, 4  ;;  %s2155_s10 = smov 256   ;;  %s25_s9 = int_to_ptr.vmem [resolvable:$true] %s24_s9 }
   0xa   :  { %s2156_s11 = smov 16   ;;  %s48_s13 = sshll.u32 %s2275_s3, 4  ;;  %s49_s13 = int_to_ptr.hbm [resolvable:$true] %s48_s13 }
   0xb   :  { %30 = dma.hbm_to_vmem [thread:$0]  %s23_s30, 768, %s25_s9, [#allocation4], %s2155_s10, %s2155_s10, %s2156_s11  }
   0xc   :  { %s2157_s14 = smov [#allocation7]   ;;  %s61_s17 = sshll.u32 %s2276_s4, 4  ;;  %s62_s17 = int_to_ptr.hbm [resolvable:$true] %s61_s17 }
   0xd   :  { %s50_s15 = sshll.u32 %s2157_s14, 4  ;;  %s2158_s18 = smov [#allocation8]   ;;  %s51_s15 = int_to_ptr.vmem [resolvable:$true] %s50_s15 }
   0xe   :  { %56 = dma.hbm_to_vmem [thread:$0]  %s49_s13, 576, %s51_s15, [#allocation6], %s2152_s7, %s2152_s7, %s2153_s8  }
   0xf   :  { %s63_s19 = sshll.u32 %s2158_s18, 4  ;;  %s2159_s20 = smov 64   ;;  %s64_s19 = int_to_ptr.vmem [resolvable:$true] %s63_s19 }
  0x10   :  { %s2160_s21 = smov 4  }
  0x11   :  { %69 = dma.hbm_to_vmem [thread:$0]  %s62_s17, 3072, %s64_s19, [#allocation9], %s2159_s20, %s2159_s20, %s2160_s21  }
  0x12   :  { %2145 = dma.done.wait [#allocation4], 768  }
  0x13   :  { %2146 = vsyncadd [#allocation4], 4294966528 }
  0x14   :  { %2147 = dma.done.wait [#allocation6], 12864  }
  0x15   :  { %2148 = vsyncadd [#allocation6], 4294954432 }
  0x16   :  { %2149 = dma.done.wait [#allocation9], 3072  }
  0x17   :  { %2150 = vsyncadd [#allocation9], 4294964224  ;;  %vm136_vm0 = vcmask 1041408   ;;  %vm137_vm1 = vcmask 1042432   ;;  %v2161_v1 = vmov 65535   ;;  %v2222_v45 = vld [vmem:[%s2272_s0] sm:$0xff] }
  0x18   :  { %v138_v2 = vsel %vm136_vm0, 4294967295, %v2161_v1  ;;  %v95_v3 = vld [vmem:[#allocation3 + $0x20] sm:$0x77]  ;;  %v96_v4 = vld [vmem:[#allocation3 + $0x28] sm:$0x77]  ;;  %vm132_vm2 = vcmask 171008  }
  0x19   :  { %v116_v5 = vunpack.c.l.b16 %v95_v3  ;;  %v117_v6 = vunpack.c.h.b16 %v95_v3  ;;  %v119_v7 = vunpack.c.h.b16 %v96_v4  ;;  %v118_v8 = vunpack.c.l.b16 %v96_v4  ;;  %v1396_v13 = vld [vmem:[#allocation3] sm:$0xf]  ;;  %v364_v14 = vld [vmem:[#allocation7 + $0x18] sm:$0x77]  ;;  %v1912_v15 = vld [vmem:[#allocation3 + $0xc] sm:$0xf0] }
  0x1a   :  { %v2212_v9 = vsel %vm137_vm1, %v138_v2, 0  ;;  %v1910_v16 = vld [vmem:[#allocation3 + $0x4] sm:$0xf]  ;;  %v1398_v17 = vld [vmem:[#allocation3 + $0x10] sm:$0xf0]  ;;  %v378_v19 = vunpack.c.l.b16 %v364_v14  ;;  %v1397_v28 = vor.u32 %v1912_v15, %v1396_v13  ;;  %v379_v32 = vunpack.c.h.b16 %v364_v14 }
  0x1b   :  { %v124_v10 = vpack.c.b16 %v116_v5, %v116_v5  ;;  %v125_v11 = vpack.c.b16 %v117_v6, %v117_v6  ;;  %v127_v12 = vpack.c.b16 %v119_v7, %v119_v7  ;;  %v126_v18 = vpack.c.b16 %v118_v8, %v118_v8  ;;  %v1911_v23 = vld [vmem:[#allocation3 + $0xc] sm:$0xf]  ;;  %v1406_v24 = vld [vmem:[#allocation3 + $0x18] sm:$0xf0]  ;;  %v365_v25 = vld [vmem:[#allocation7 + $0x20] sm:$0x7] }
  0x1c   :  { %v384_v26 = vpack.c.b16 %v378_v19, %v378_v19  ;;  %v380_v27 = vunpack.c.l.b16 %v365_v25  ;;  %v1401_v29 = vor.u32 %v1910_v16, %v1398_v17  ;;  %v1515_v30 = vld [vmem:[#allocation5 + $0xa8] sm:$0xf]  ;;  %v1936_v31 = vld [vmem:[#allocation5 + $0xb0] sm:$0xf0]  ;;  %v1409_v33 = vor.u32 %v1911_v23, %v1406_v24  ;;  %v1404_v35 = vld [vmem:[#allocation3 + $0x8] sm:$0xf] }
  0x1d   :  { %v141_v20 = vand.u32 %v2212_v9, %v124_v10  ;;  %v144_v21 = vand.u32 %v2212_v9, %v125_v11  ;;  %v150_v22 = vand.u32 %v2212_v9, %v127_v12  ;;  %v147_v34 = vand.u32 %v2212_v9, %v126_v18  ;;  %v1416_v37 = vld [vmem:[#allocation7] sm:$0xf]  ;;  %v2011_v38 = vld [vmem:[#allocation7 + $0x8] sm:$0xf0]  ;;  %v1913_v39 = vld [vmem:[#allocation3 + $0x14] sm:$0xf0] }
  0x1e   :  { %v391_v36 = vand.u32 %v384_v26, %v2212_v9  ;;  %v1611_v40 = vld [vmem:[#allocation5 + $0x168] sm:$0xf]  ;;  %v1960_v41 = vld [vmem:[#allocation5 + $0x170] sm:$0xf0]  ;;  %v386_v42 = vpack.c.b16 %v380_v27, %v380_v27  ;;  %v1516_v43 = vor.u32 %v1936_v31, %v1515_v30  ;;  %v385_v44 = vpack.c.b16 %v379_v32, %v379_v32  ;;  %v1503_v46 = vld [vmem:[#allocation5 + $0x90] sm:$0xf] }
  0x1f   :  { %158 = vmatpush.bf16.msra.mxu2 %v141_v20  ;;  %172 = vmatpush.bf16.msra.mxu1 %v144_v21  ;;  %v1933_v47 = vld [vmem:[#allocation5 + $0x98] sm:$0xf0]  ;;  %v1417_v48 = vor.u32 %v2011_v38, %v1416_v37  ;;  %v1405_v50 = vor.u32 %v1913_v39, %v1404_v35  ;;  %v1612_v51 = vor.u32 %v1960_v41, %v1611_v40  ;;  %v1599_v53 = vld [vmem:[#allocation5 + $0x150] sm:$0xf]  ;;  %v1424_v55 = vld [vmem:[#allocation7 + $0x8] sm:$0xf] }
  0x20   :  { %200 = vmatpush.bf16.msra.mxu3 %v150_v22  ;;  %405 = vmatpush.bf16.msra.mxu0 %v391_v36  ;;  %v394_v49 = vand.u32 %v385_v44, %v2212_v9  ;;  %v397_v52 = vand.u32 %v386_v42, %v2212_v9  ;;  %v1957_v54 = vld [vmem:[#allocation5 + $0x158] sm:$0xf0]  ;;  %v1504_v56 = vor.u32 %v1933_v47, %v1503_v46  ;;  %v2012_v57 = vld [vmem:[#allocation7 + $0x10] sm:$0xf0]  ;;  %v1491_v58 = vld [vmem:[#allocation5 + $0x78] sm:$0xf] }
  0x21   :  { %v1930_v59 = vld [vmem:[#allocation5 + $0x80] sm:$0xf0]  ;;  %v1418_v61 = vld [vmem:[#allocation7 + $0xc] sm:$0xf0]  ;;  %v1600_v62 = vor.u32 %v1957_v54, %v1599_v53  ;;  %v1707_v0 = vld [vmem:[#allocation5 + $0x228] sm:$0xf]  ;;  %v1425_v2 = vor.u32 %v2012_v57, %v1424_v55 }
  0x22   :  { %v2010_v60 = vld [vmem:[#allocation7 + $0x4] sm:$0xf]  ;;  %v1984_v1 = vld [vmem:[#allocation5 + $0x230] sm:$0xf0]  ;;  %v1587_v3 = vld [vmem:[#allocation5 + $0x138] sm:$0xf]  ;;  %v1492_v5 = vor.u32 %v1930_v59, %v1491_v58 }
  0x23   :  { %159 = vmatpush.bf16.msra.mxu2 %v1397_v28  ;;  %173 = vmatpush.bf16.msra.mxu1 %v1401_v29  ;;  %v1421_v63 = vor.u32 %v2010_v60, %v1418_v61  ;;  %v1954_v4 = vld [vmem:[#allocation5 + $0x140] sm:$0xf0]  ;;  %v1708_v6 = vor.u32 %v1984_v1, %v1707_v0  ;;  %v1479_v7 = vld [vmem:[#allocation5 + $0x60] sm:$0xf]  ;;  %v1927_v8 = vld [vmem:[#allocation5 + $0x68] sm:$0xf0] }
  0x24   :  { %201 = vmatpush.bf16.msra.mxu3 %v1409_v33  ;;  %406 = vmatpush.bf16.msra.mxu0 %v1417_v48  ;;  %v1695_v9 = vld [vmem:[#allocation5 + $0x210] sm:$0xf]  ;;  %v1981_v10 = vld [vmem:[#allocation5 + $0x218] sm:$0xf0]  ;;  %v1588_v11 = vor.u32 %v1954_v4, %v1587_v3  ;;  %v1575_v13 = vld [vmem:[#allocation5 + $0x120] sm:$0xf]  ;;  %v1480_v15 = vor.u32 %v1927_v8, %v1479_v7 }
  0x25   :  { %v1696_v12 = vor.u32 %v1981_v10, %v1695_v9  ;;  %v1951_v14 = vld [vmem:[#allocation5 + $0x128] sm:$0xf0]  ;;  %v1467_v16 = vld [vmem:[#allocation5 + $0x48] sm:$0xf]  ;;  %v1924_v17 = vld [vmem:[#allocation5 + $0x50] sm:$0xf0] }
  0x26   :  { %1410 = vmatmul.msk.bf16.vlgmr.msra.gmra.mxu2 %vm132_vm2, %v2222_v45  ;;  %1411 = vmatmul.msk.bf16.vlgmr.msra.gmra.mxu1 %vm132_vm2, %v2222_v45  ;;  %v1683_v18 = vld [vmem:[#allocation5 + $0x1f8] sm:$0xf]  ;;  %v1978_v19 = vld [vmem:[#allocation5 + $0x200] sm:$0xf0]  ;;  %v1803_v21 = vld [vmem:[#allocation5 + $0x2e8] sm:$0xf]  ;;  %v1576_v23 = vor.u32 %v1951_v14, %v1575_v13  ;;  %v1468_v26 = vor.u32 %v1924_v17, %v1467_v16 }
  0x27   :  { %186 = vmatpush.bf16.msrb.mxu2 %v147_v34  ;;  %419 = vmatpush.bf16.msrb.mxu1 %v394_v49  ;;  %v1684_v20 = vor.u32 %v1978_v19, %v1683_v18  ;;  %v2008_v22 = vld [vmem:[#allocation5 + $0x2f0] sm:$0xf0]  ;;  %v1563_v24 = vld [vmem:[#allocation5 + $0x108] sm:$0xf]  ;;  %v1671_v27 = vld [vmem:[#allocation5 + $0x1e0] sm:$0xf] }
  0x28   :  { %953 = vmatpush.bf16.msrb.mxu3 %v1516_v43  ;;  %967 = vmatpush.bf16.msrb.mxu0 %v1612_v51  ;;  %v1948_v25 = vld [vmem:[#allocation5 + $0x110] sm:$0xf0]  ;;  %v1975_v28 = vld [vmem:[#allocation5 + $0x1e8] sm:$0xf0]  ;;  %v1455_v29 = vld [vmem:[#allocation5 + $0x30] sm:$0xf]  ;;  %v1804_v31 = vor.u32 %v2008_v22, %v1803_v21 }
  0x29   :  { %1413 = vmatmul.msk.bf16.vlgmr.msra.gmra.mxu3 %vm132_vm2, %v2222_v45  ;;  %1426 = vmatmul.msk.bf16.vlgmr.msra.gmra.mxu0 %vm132_vm2, %v2222_v45  ;;  %v1921_v30 = vld [vmem:[#allocation5 + $0x38] sm:$0xf0]  ;;  %v1672_v32 = vor.u32 %v1975_v28, %v1671_v27  ;;  %v1791_v33 = vld [vmem:[#allocation5 + $0x2d0] sm:$0xf]  ;;  %v1564_v35 = vor.u32 %v1948_v25, %v1563_v24  ;;  %v1659_v39 = vld [vmem:[#allocation5 + $0x1c8] sm:$0xf] }
  0x2a   :  { %v2005_v34 = vld [vmem:[#allocation5 + $0x2d8] sm:$0xf0]  ;;  %v1551_v36 = vld [vmem:[#allocation5 + $0xf0] sm:$0xf]  ;;  %v1456_v38 = vor.u32 %v1921_v30, %v1455_v29  ;;  %v1972_v40 = vld [vmem:[#allocation5 + $0x1d0] sm:$0xf0] }
  0x2b   :  { %187 = vmatpush.bf16.msrb.mxu2 %v1405_v50  ;;  %420 = vmatpush.bf16.msrb.mxu1 %v1421_v63  ;;  %v1945_v37 = vld [vmem:[#allocation5 + $0xf8] sm:$0xf0]  ;;  %v1443_v41 = vld [vmem:[#allocation5 + $0x18] sm:$0xf]  ;;  %v1918_v42 = vld [vmem:[#allocation5 + $0x20] sm:$0xf0]  ;;  %v1792_v43 = vor.u32 %v2005_v34, %v1791_v33  ;;  %v1660_v44 = vor.u32 %v1972_v40, %v1659_v39 }
  0x2c   :  { %954 = vmatpush.bf16.msrb.mxu3 %v1504_v56  ;;  %968 = vmatpush.bf16.msrb.mxu0 %v1600_v62  ;;  %v1779_v46 = vld [vmem:[#allocation5 + $0x2b8] sm:$0xf]  ;;  %v2002_v47 = vld [vmem:[#allocation5 + $0x2c0] sm:$0xf0]  ;;  %v1552_v48 = vor.u32 %v1945_v37, %v1551_v36  ;;  %v1647_v49 = vld [vmem:[#allocation5 + $0x1b0] sm:$0xf] }
  0x2d   :  { %v1539_v50 = vld [vmem:[#allocation5 + $0xd8] sm:$0xf]  ;;  %v1942_v51 = vld [vmem:[#allocation5 + $0xe0] sm:$0xf0]  ;;  %v1969_v53 = vld [vmem:[#allocation5 + $0x1b8] sm:$0xf0]  ;;  %v1780_v56 = vor.u32 %v2002_v47, %v1779_v46 }
  0x2e   :  { %v1431_v54 = vld [vmem:[#allocation5] sm:$0xf]  ;;  %v1915_v55 = vld [vmem:[#allocation5 + $0x8] sm:$0xf0]  ;;  %v1517_v58 = vld [vmem:[#allocation5 + $0xb4] sm:$0xf0]  ;;  %v1648_v59 = vor.u32 %v1969_v53, %v1647_v49  ;;  %v1540_v62 = vor.u32 %v1942_v51, %v1539_v50 }
  0x2f   :  { %433 = vmatpush.bf16.msra.mxu2 %v397_v52  ;;  %981 = vmatpush.bf16.msra.mxu1 %v1708_v6  ;;  %v1444_v52 = vor.u32 %v1918_v42, %v1443_v41  ;;  %v1935_v57 = vld [vmem:[#allocation5 + $0xac] sm:$0xf]  ;;  %v1767_v60 = vld [vmem:[#allocation5 + $0x2a0] sm:$0xf]  ;;  %v1432_v1 = vor.u32 %v1915_v55, %v1431_v54  ;;  %v1613_v3 = vld [vmem:[#allocation5 + $0x174] sm:$0xf0] }
  0x30   :  { %955 = vmatpush.bf16.msrb.mxu3 %v1492_v5  ;;  %969 = vmatpush.bf16.msrb.mxu0 %v1588_v11  ;;  %v1999_v61 = vld [vmem:[#allocation5 + $0x2a8] sm:$0xf0]  ;;  %v1527_v63 = vld [vmem:[#allocation5 + $0xc0] sm:$0xf]  ;;  %v1520_v4 = vor.u32 %v1935_v57, %v1517_v58  ;;  %v1932_v6 = vld [vmem:[#allocation5 + $0x94] sm:$0xf] }
  0x31   :  { %v1939_v0 = vld [vmem:[#allocation5 + $0xc8] sm:$0xf0]  ;;  %v1768_v5 = vor.u32 %v1999_v61, %v1767_v60  ;;  %v1505_v7 = vld [vmem:[#allocation5 + $0x9c] sm:$0xf0]  ;;  %v1755_v8 = vld [vmem:[#allocation5 + $0x288] sm:$0xf] }
  0x32   :  { %v1996_v9 = vld [vmem:[#allocation5 + $0x290] sm:$0xf0]  ;;  %v1528_v10 = vor.u32 %v1939_v0, %v1527_v63  ;;  %v1601_v13 = vld [vmem:[#allocation5 + $0x15c] sm:$0xf0]  ;;  %v1508_v14 = vor.u32 %v1932_v6, %v1505_v7  ;;  %v1929_v16 = vld [vmem:[#allocation5 + $0x7c] sm:$0xf] }
  0x33   :  { %434 = vmatpush.bf16.msra.mxu2 %v1425_v2  ;;  %982 = vmatpush.bf16.msra.mxu1 %v1696_v12  ;;  %v1959_v2 = vld [vmem:[#allocation5 + $0x16c] sm:$0xf]  ;;  %v1956_v12 = vld [vmem:[#allocation5 + $0x154] sm:$0xf]  ;;  %v1493_v17 = vld [vmem:[#allocation5 + $0x84] sm:$0xf0] }
  0x34   :  { %956 = vmatpush.bf16.msrb.mxu3 %v1480_v15  ;;  %970 = vmatpush.bf16.msrb.mxu0 %v1576_v23  ;;  %v1616_v11 = vor.u32 %v1959_v2, %v1613_v3  ;;  %v1756_v15 = vor.u32 %v1996_v9, %v1755_v8  ;;  %v1743_v18 = vld [vmem:[#allocation5 + $0x270] sm:$0xf]  ;;  %v1993_v19 = vld [vmem:[#allocation5 + $0x278] sm:$0xf0]  ;;  %v1589_v22 = vld [vmem:[#allocation5 + $0x144] sm:$0xf0]  ;;  %v1496_v23 = vor.u32 %v1929_v16, %v1493_v17 }
  0x35   :  { %v1953_v21 = vld [vmem:[#allocation5 + $0x13c] sm:$0xf]  ;;  %v1744_v24 = vor.u32 %v1993_v19, %v1743_v18  ;;  %v1731_v25 = vld [vmem:[#allocation5 + $0x258] sm:$0xf]  ;;  %v1950_v28 = vld [vmem:[#allocation5 + $0x124] sm:$0xf] }
  0x36   :  { %1412 = vmatmul.msk.bf16.vlgmr.msrb.gmra.mxu2 %vm132_vm2, %v2222_v45  ;;  %1427 = vmatmul.msk.bf16.vlgmr.msrb.gmra.mxu1 %vm132_vm2, %v2222_v45  ;;  %v1592_v27 = vor.u32 %v1953_v21, %v1589_v22  ;;  %v1577_v29 = vld [vmem:[#allocation5 + $0x12c] sm:$0xf0]  ;;  %v2007_v33 = vld [vmem:[#allocation5 + $0x2ec] sm:$0xf]  ;;  %v1805_v34 = vld [vmem:[#allocation5 + $0x2f4] sm:$0xf0] }
  0x37   :  { %983 = vmatpush.bf16.msra.mxu1 %v1684_v20  ;;  %995 = vmatpush.bf16.msrb.mxu2 %v1804_v31  ;;  %v1604_v20 = vor.u32 %v1956_v12, %v1601_v13  ;;  %v1719_v31 = vld [vmem:[#allocation5 + $0x240] sm:$0xf]  ;;  %v1808_v36 = vor.u32 %v2007_v33, %v1805_v34  ;;  %v2004_v37 = vld [vmem:[#allocation5 + $0x2d4] sm:$0xf]  ;;  %v2001_v40 = vld [vmem:[#allocation5 + $0x2bc] sm:$0xf] }
  0x38   :  { %957 = vmatpush.bf16.msrb.mxu3 %v1468_v26  ;;  %971 = vmatpush.bf16.msrb.mxu0 %v1564_v35  ;;  %v1990_v26 = vld [vmem:[#allocation5 + $0x260] sm:$0xf0]  ;;  %v1781_v41 = vld [vmem:[#allocation5 + $0x2c4] sm:$0xf0]  ;;  %v1635_v47 = vld [vmem:[#allocation5 + $0x198] sm:$0xf] }
  0x39   :  { %v1732_v30 = vor.u32 %v1990_v26, %v1731_v25  ;;  %v1784_v42 = vor.u32 %v2001_v40, %v1781_v41  ;;  %v1926_v50 = vld [vmem:[#allocation5 + $0x64] sm:$0xf]  ;;  %v1481_v51 = vld [vmem:[#allocation5 + $0x6c] sm:$0xf0]  ;;  %v1944_v55 = vld [vmem:[#allocation5 + $0xf4] sm:$0xf] }
  0x3a   :  { %v1484_v53 = vor.u32 %v1926_v50, %v1481_v51  ;;  %v1769_v54 = vld [vmem:[#allocation5 + $0x2ac] sm:$0xf0]  ;;  %v1963_v60 = vld [vmem:[#allocation5 + $0x188] sm:$0xf0]  ;;  %v1469_v63 = vld [vmem:[#allocation5 + $0x54] sm:$0xf0] }
  0x3b   :  { %984 = vmatpush.bf16.msra.mxu1 %v1672_v32  ;;  %996 = vmatpush.bf16.msrb.mxu2 %v1792_v43  ;;  %v1987_v32 = vld [vmem:[#allocation5 + $0x248] sm:$0xf0]  ;;  %v1709_v2 = vld [vmem:[#allocation5 + $0x234] sm:$0xf0]  ;;  %v1941_v7 = vld [vmem:[#allocation5 + $0xdc] sm:$0xf] }
  0x3c   :  { %958 = vmatpush.bf16.msrb.mxu3 %v1456_v38  ;;  %972 = vmatpush.bf16.msrb.mxu0 %v1552_v48  ;;  %v1720_v35 = vor.u32 %v1987_v32, %v1719_v31  ;;  %v1793_v38 = vld [vmem:[#allocation5 + $0x2dc] sm:$0xf0]  ;;  %v1947_v43 = vld [vmem:[#allocation5 + $0x10c] sm:$0xf]  ;;  %v1966_v48 = vld [vmem:[#allocation5 + $0x1a0] sm:$0xf0] }
  0x3d   :  { %v1796_v39 = vor.u32 %v2004_v37, %v1793_v38  ;;  %v1636_v49 = vor.u32 %v1966_v48, %v1635_v47  ;;  %v1983_v0 = vld [vmem:[#allocation5 + $0x22c] sm:$0xf]  ;;  %v1541_v8 = vld [vmem:[#allocation5 + $0xe4] sm:$0xf0]  ;;  %v1980_v12 = vld [vmem:[#allocation5 + $0x214] sm:$0xf] }
  0x3e   :  { %v1995_v3 = vld [vmem:[#allocation5 + $0x28c] sm:$0xf]  ;;  %v1544_v9 = vor.u32 %v1941_v7, %v1541_v8  ;;  %v1745_v16 = vld [vmem:[#allocation5 + $0x27c] sm:$0xf0]  ;;  %v1938_v19 = vld [vmem:[#allocation5 + $0xc4] sm:$0xf] }
  0x3f   :  { %985 = vmatpush.bf16.msra.mxu1 %v1660_v44  ;;  %997 = vmatpush.bf16.msrb.mxu2 %v1780_v56  ;;  %v1565_v44 = vld [vmem:[#allocation5 + $0x114] sm:$0xf0]  ;;  %v1553_v56 = vld [vmem:[#allocation5 + $0xfc] sm:$0xf0]  ;;  %v1917_v22 = vld [vmem:[#allocation5 + $0x1c] sm:$0xf] }
  0x40   :  { %959 = vmatpush.bf16.msrb.mxu3 %v1444_v52  ;;  %973 = vmatpush.bf16.msrb.mxu0 %v1540_v62  ;;  %v1568_v46 = vor.u32 %v1947_v43, %v1565_v44  ;;  %v1998_v52 = vld [vmem:[#allocation5 + $0x2a4] sm:$0xf]  ;;  %v1556_v58 = vor.u32 %v1944_v55, %v1553_v56  ;;  %v1923_v62 = vld [vmem:[#allocation5 + $0x4c] sm:$0xf]  ;;  %v1685_v26 = vld [vmem:[#allocation5 + $0x204] sm:$0xf0] }
  0x41   :  { %v1772_v57 = vor.u32 %v1998_v52, %v1769_v54  ;;  %v1914_v31 = vld [vmem:[#allocation5 + $0x4] sm:$0xf]  ;;  %v1433_v32 = vld [vmem:[#allocation5 + $0xc] sm:$0xf0]  ;;  %v1661_v40 = vld [vmem:[#allocation5 + $0x1d4] sm:$0xf0] }
  0x42   :  { %v1974_v33 = vld [vmem:[#allocation5 + $0x1e4] sm:$0xf]  ;;  %v1436_v34 = vor.u32 %v1914_v31, %v1433_v32  ;;  %v1649_v43 = vld [vmem:[#allocation5 + $0x1bc] sm:$0xf0]  ;;  %v1637_v47 = vld [vmem:[#allocation5 + $0x1a4] sm:$0xf0] }
  0x43   :  { %986 = vmatpush.bf16.msra.mxu1 %v1648_v59  ;;  %998 = vmatpush.bf16.msrb.mxu2 %v1768_v5  ;;  %v1623_v59 = vld [vmem:[#allocation5 + $0x180] sm:$0xf]  ;;  %v1712_v5 = vor.u32 %v1983_v0, %v1709_v2  ;;  %v1962_v50 = vld [vmem:[#allocation5 + $0x184] sm:$0xf]  ;;  %v1625_v51 = vld [vmem:[#allocation5 + $0x18c] sm:$0xf0] }
  0x44   :  { %960 = vmatpush.bf16.msrb.mxu3 %v1432_v1  ;;  %974 = vmatpush.bf16.msrb.mxu0 %v1528_v10  ;;  %v1624_v61 = vor.u32 %v1963_v60, %v1623_v59  ;;  %v1472_v1 = vor.u32 %v1923_v62, %v1469_v63  ;;  %v1920_v10 = vld [vmem:[#allocation5 + $0x34] sm:$0xf]  ;;  %v1628_v52 = vor.u32 %v1962_v50, %v1625_v51  ;;  %v1619_v56 = vld [vmem:[#allocation5 + $0x170] sm:$0xf]  ;;  %v1607_v62 = vld [vmem:[#allocation5 + $0x158] sm:$0xf] }
  0x45   :  { %v1958_v63 = vld [vmem:[#allocation5 + $0x160] sm:$0xf0]  ;;  %v1523_v0 = vld [vmem:[#allocation5 + $0xb0] sm:$0xf]  ;;  %v2003_v31 = vld [vmem:[#allocation5 + $0x2c8] sm:$0xf0] }
  0x46   :  { %1428 = vmatmul.msk.bf16.vlgmr.msra.gmra.mxu2 %vm132_vm2, %v2222_v45  ;;  %v1580_v45 = vor.u32 %v1950_v28, %v1577_v29  ;;  %v1733_v28 = vld [vmem:[#allocation5 + $0x264] sm:$0xf0]  ;;  %v1571_v32 = vld [vmem:[#allocation5 + $0x110] sm:$0xf]  ;;  %v1985_v50 = vld [vmem:[#allocation5 + $0x238] sm:$0xf0] }
  0x47   :  { %999 = vmatpush.bf16.msrb.mxu2 %v1756_v15  ;;  %987 = vmatpush.bf16.msra.mxu1 %v1636_v49  ;;  %v1992_v15 = vld [vmem:[#allocation5 + $0x274] sm:$0xf]  ;;  %v1763_v51 = vld [vmem:[#allocation5 + $0x290] sm:$0xf]  ;;  %vm1380_vm3 = vcmask 7168  }
  0x48   :  { %1009 = vmatpush.bf16.msra.mxu3 %v1520_v4  ;;  %1023 = vmatpush.bf16.msra.mxu0 %v1616_v11  ;;  %v1757_v4 = vld [vmem:[#allocation5 + $0x294] sm:$0xf0]  ;;  %v1457_v11 = vld [vmem:[#allocation5 + $0x3c] sm:$0xf0]  ;;  %v1748_v18 = vor.u32 %v1992_v15, %v1745_v16 }
  0x49   :  { %v1760_v6 = vor.u32 %v1995_v3, %v1757_v4  ;;  %v1460_v13 = vor.u32 %v1920_v10, %v1457_v11  ;;  %v1608_v4 = vor.u32 %v1958_v63, %v1607_v62  ;;  %v1595_v10 = vld [vmem:[#allocation5 + $0x140] sm:$0xf]  ;;  %v1955_v11 = vld [vmem:[#allocation5 + $0x148] sm:$0xf0]  ;;  %v1511_v16 = vld [vmem:[#allocation5 + $0x98] sm:$0xf] }
  0x4a   :  { %v1463_v62 = vld [vmem:[#allocation5 + $0x38] sm:$0xf]  ;;  %v1922_v63 = vld [vmem:[#allocation5 + $0x40] sm:$0xf0] }
  0x4b   :  { %1000 = vmatpush.bf16.msrb.mxu2 %v1744_v24  ;;  %988 = vmatpush.bf16.msra.mxu1 %v1624_v61  ;;  %v1977_v24 = vld [vmem:[#allocation5 + $0x1fc] sm:$0xf] }
  0x4c   :  { %1010 = vmatpush.bf16.msra.mxu3 %v1508_v14  ;;  %1024 = vmatpush.bf16.msra.mxu0 %v1604_v20  ;;  %v1697_v14 = vld [vmem:[#allocation5 + $0x21c] sm:$0xf0]  ;;  %v1529_v20 = vld [vmem:[#allocation5 + $0xcc] sm:$0xf0]  ;;  %v1688_v29 = vor.u32 %v1977_v24, %v1685_v26 }
  0x4d   :  { %v1700_v17 = vor.u32 %v1980_v12, %v1697_v14  ;;  %v1532_v21 = vor.u32 %v1938_v19, %v1529_v20  ;;  %v1596_v19 = vor.u32 %v1955_v11, %v1595_v10  ;;  %v1799_v20 = vld [vmem:[#allocation5 + $0x2d8] sm:$0xf]  ;;  %v1499_v26 = vld [vmem:[#allocation5 + $0x80] sm:$0xf]  ;;  %v1919_v11 = vld [vmem:[#allocation5 + $0x28] sm:$0xf0] }
  0x4e   :  { %v1451_v10 = vld [vmem:[#allocation5 + $0x20] sm:$0xf] }
  0x4f   :  { %1001 = vmatpush.bf16.msrb.mxu2 %v1732_v30  ;;  %1037 = vmatpush.bf16.msrb.mxu1 %v1712_v5  ;;  %v1811_v5 = vld [vmem:[#allocation5 + $0x2f0] sm:$0xf] }
  0x50   :  { %1011 = vmatpush.bf16.msra.mxu3 %v1496_v23  ;;  %1025 = vmatpush.bf16.msra.mxu0 %v1592_v27  ;;  %v1445_v23 = vld [vmem:[#allocation5 + $0x24] sm:$0xf0]  ;;  %v1989_v27 = vld [vmem:[#allocation5 + $0x25c] sm:$0xf] }
  0x51   :  { %v1448_v25 = vor.u32 %v1917_v22, %v1445_v23  ;;  %v1736_v30 = vor.u32 %v1989_v27, %v1733_v28  ;;  %v1583_v22 = vld [vmem:[#allocation5 + $0x128] sm:$0xf]  ;;  %v1952_v23 = vld [vmem:[#allocation5 + $0x130] sm:$0xf0]  ;;  %v1931_v27 = vld [vmem:[#allocation5 + $0x88] sm:$0xf0] }
  0x53   :  { %1002 = vmatpush.bf16.msrb.mxu2 %v1720_v35  ;;  %1038 = vmatpush.bf16.msrb.mxu1 %v1700_v17  ;;  %v1986_v35 = vld [vmem:[#allocation5 + $0x244] sm:$0xf] }
  0x54   :  { %1026 = vmatpush.bf16.msra.mxu0 %v1580_v45  ;;  %1012 = vmatpush.bf16.msra.mxu3 %v1484_v53  ;;  %v1673_v45 = vld [vmem:[#allocation5 + $0x1ec] sm:$0xf0]  ;;  %v1934_v17 = vld [vmem:[#allocation5 + $0xa0] sm:$0xf0] }
  0x55   :  { %v1676_v37 = vor.u32 %v1974_v33, %v1673_v45  ;;  %v1512_v24 = vor.u32 %v1934_v17, %v1511_v16  ;;  %v1949_v33 = vld [vmem:[#allocation5 + $0x118] sm:$0xf0]  ;;  %v1739_v16 = vld [vmem:[#allocation5 + $0x260] sm:$0xf]  ;;  %v1991_v17 = vld [vmem:[#allocation5 + $0x268] sm:$0xf0] }
  0x57   :  { %1051 = vmatpush.bf16.msra.mxu2 %v1808_v36  ;;  %1039 = vmatpush.bf16.msrb.mxu1 %v1688_v29  ;;  %v1721_v36 = vld [vmem:[#allocation5 + $0x24c] sm:$0xf0]  ;;  %v1584_v29 = vor.u32 %v1952_v23, %v1583_v22  ;;  %v1439_v22 = vld [vmem:[#allocation5 + $0x8] sm:$0xf]  ;;  %v1916_v23 = vld [vmem:[#allocation5 + $0x10] sm:$0xf0] }
  0x58   :  { %1027 = vmatpush.bf16.msra.mxu0 %v1568_v46  ;;  %1013 = vmatpush.bf16.msra.mxu3 %v1472_v1  ;;  %v1724_v38 = vor.u32 %v1986_v35, %v1721_v36  ;;  %v1965_v46 = vld [vmem:[#allocation5 + $0x19c] sm:$0xf]  ;;  %v1487_v35 = vld [vmem:[#allocation5 + $0x68] sm:$0xf]  ;;  %v1928_v36 = vld [vmem:[#allocation5 + $0x70] sm:$0xf0] }
  0x59   :  { %v1640_v48 = vor.u32 %v1965_v46, %v1637_v47  ;;  %v1937_v1 = vld [vmem:[#allocation5 + $0xb8] sm:$0xf0]  ;;  %v1715_v47 = vld [vmem:[#allocation5 + $0x230] sm:$0xf] }
  0x5a   :  { %v1925_v46 = vld [vmem:[#allocation5 + $0x58] sm:$0xf0] }
  0x5b   :  { %1052 = vmatpush.bf16.msra.mxu2 %v1796_v39  ;;  %1040 = vmatpush.bf16.msrb.mxu1 %v1676_v37  ;;  %v1971_v39 = vld [vmem:[#allocation5 + $0x1cc] sm:$0xf]  ;;  %v1572_v37 = vor.u32 %v1949_v33, %v1571_v32  ;;  %v1973_v32 = vld [vmem:[#allocation5 + $0x1d8] sm:$0xf0] }
  0x5c   :  { %1028 = vmatpush.bf16.msra.mxu0 %v1556_v58  ;;  %1014 = vmatpush.bf16.msra.mxu3 %v1460_v13  ;;  %v1664_v41 = vor.u32 %v1971_v39, %v1661_v40  ;;  %v1524_v13 = vor.u32 %v1937_v1, %v1523_v0  ;;  %v2000_v39 = vld [vmem:[#allocation5 + $0x2b0] sm:$0xf0]  ;;  %v1559_v40 = vld [vmem:[#allocation5 + $0xf8] sm:$0xf] }
  0x5d   :  { %v1703_v0 = vld [vmem:[#allocation5 + $0x218] sm:$0xf] }
  0x5f   :  { %1053 = vmatpush.bf16.msra.mxu2 %v1784_v42  ;;  %1041 = vmatpush.bf16.msrb.mxu1 %v1664_v41  ;;  %v1968_v42 = vld [vmem:[#allocation5 + $0x1b4] sm:$0xf]  ;;  %v1946_v41 = vld [vmem:[#allocation5 + $0x100] sm:$0xf0] }
  0x60   :  { %1029 = vmatpush.bf16.msra.mxu0 %v1544_v9  ;;  %1015 = vmatpush.bf16.msra.mxu3 %v1448_v25  ;;  %v1652_v44 = vor.u32 %v1968_v42, %v1649_v43  ;;  %v1488_v42 = vor.u32 %v1928_v36, %v1487_v35  ;;  %v1643_v36 = vld [vmem:[#allocation5 + $0x1a0] sm:$0xf] }
  0x63   :  { %1054 = vmatpush.bf16.msra.mxu2 %v1772_v57  ;;  %1042 = vmatpush.bf16.msrb.mxu1 %v1652_v44  ;;  %v1961_v57 = vld [vmem:[#allocation5 + $0x178] sm:$0xf0]  ;;  %v1475_v44 = vld [vmem:[#allocation5 + $0x50] sm:$0xf] }
  0x64   :  { %1030 = vmatpush.bf16.msra.mxu0 %v1532_v21  ;;  %1016 = vmatpush.bf16.msra.mxu3 %v1436_v34  ;;  %v1620_v60 = vor.u32 %v1961_v57, %v1619_v56  ;;  %v2006_v21 = vld [vmem:[#allocation5 + $0x2e0] sm:$0xf0]  ;;  %v1500_v34 = vor.u32 %v1931_v27, %v1499_v26  ;;  %v1943_v56 = vld [vmem:[#allocation5 + $0xe8] sm:$0xf0]  ;;  %v1476_v57 = vor.u32 %v1925_v46, %v1475_v44  ;;  %v1727_v26 = vld [vmem:[#allocation5 + $0x248] sm:$0xf] }
  0x65   :  { %v1800_v25 = vor.u32 %v2006_v21, %v1799_v20  ;;  %v1740_v21 = vor.u32 %v1991_v17, %v1739_v16  ;;  %v1988_v27 = vld [vmem:[#allocation5 + $0x250] sm:$0xf0]  ;;  %v2016_v44 = vld [vmem:[#allocation8 + $0x18] sm:$0xff] }
  0x66   :  { %v2028_v46 = vld [vmem:[#allocation8 + $0x78] sm:$0xff]  ;;  %v2031_v16 = vld [vmem:[#allocation8 + $0x90] sm:$0xff] }
  0x67   :  { %1055 = vmatpush.bf16.msra.mxu2 %v1760_v6  ;;  %1043 = vmatpush.bf16.msrb.mxu1 %v1640_v48  ;;  %v2009_v6 = vld [vmem:[#allocation5 + $0x2f8] sm:$0xf0] }
  0x68   :  { %v1812_v15 = vor.u32 %v2009_v6, %v1811_v5  ;;  %v1535_v5 = vld [vmem:[#allocation5 + $0xc8] sm:$0xf]  ;;  %v1940_v6 = vld [vmem:[#allocation5 + $0xd0] sm:$0xf0] }
  0x6b   :  { %1056 = vmatpush.bf16.msra.mxu2 %v1748_v18  ;;  %1044 = vmatpush.bf16.msrb.mxu1 %v1628_v52  ;;  %v1997_v52 = vld [vmem:[#allocation5 + $0x298] sm:$0xf0] }
  0x6f   :  { %1057 = vmatpush.bf16.msra.mxu2 %v1736_v30  ;;  %v1787_v30 = vld [vmem:[#allocation5 + $0x2c0] sm:$0xf] }
  0x70   :  { %v1788_v45 = vor.u32 %v2003_v31, %v1787_v30  ;;  %v1728_v30 = vor.u32 %v1988_v27, %v1727_v26  ;;  %v1667_v31 = vld [vmem:[#allocation5 + $0x1d0] sm:$0xf] }
  0x71   :  { %v1668_v33 = vor.u32 %v1973_v32, %v1667_v31 }
  0x73   :  { %1058 = vmatpush.bf16.msra.mxu2 %v1724_v38  ;;  %v1775_v38 = vld [vmem:[#allocation5 + $0x2a8] sm:$0xf] }
  0x74   :  { %v1776_v43 = vor.u32 %v2000_v39, %v1775_v38  ;;  %v1631_v38 = vld [vmem:[#allocation5 + $0x188] sm:$0xf]  ;;  %v1964_v39 = vld [vmem:[#allocation5 + $0x190] sm:$0xf0] }
  0xa3   :  { %v175_v49 = vpop.f32.mrf.mxu1 }
  0xa4   :  { %v221_v54 = vmax.f32 %v175_v49, 0.0  ;;  %v1560_v49 = vor.u32 %v1946_v41, %v1559_v40  ;;  %v1632_v40 = vor.u32 %v1964_v39, %v1631_v38  ;;  %v2020_v41 = vld [vmem:[#allocation8 + $0x38] sm:$0xff] }
  0xa9   :  { %v161_v53 = vpop.f32.mrf.mxu2 }
  0xaa   :  { %v220_v7 = vmax.f32 %v161_v53, 0.0 }
  0xab   :  { %v177_v58 = vpop.f32.mrf.mxu1 }
  0xac   :  { %v203_v55 = vpop.f32.mrf.mxu3  ;;  %v225_v59 = vmax.f32 %v177_v58, 0.0 }
  0xad   :  { %v223_v2 = vmax.f32 %v203_v55, 0.0  ;;  %v1547_v55 = vld [vmem:[#allocation5 + $0xe0] sm:$0xf] }
  0xae   :  { %v2240_v61 = vpack.c.bf16 %v225_v59, %v221_v54  ;;  %v1716_v59 = vor.u32 %v1985_v50, %v1715_v47  ;;  %v1548_v1 = vor.u32 %v1943_v56, %v1547_v55  ;;  %v2015_v47 = vld [vmem:[#allocation8 + $0x10] sm:$0xff]  ;;  %v2014_v50 = vld [vmem:[#allocation8 + $0x8] sm:$0xff] }
  0xb0   :  { %975 = vmatmul.bf16.vlgmr.msrb.gmra.mxu0 %v2240_v61 }
  0xb1   :  { %v163_v3 = vpop.f32.mrf.mxu2  ;;  %1079 = vmatpush.bf16.msrb.mxu0 %v1620_v60  ;;  %v1764_v60 = vor.u32 %v1997_v52, %v1763_v51  ;;  %v2026_v51 = vld [vmem:[#allocation8 + $0x68] sm:$0xff] }
  0xb2   :  { %v224_v8 = vmax.f32 %v163_v3, 0.0  ;;  %v1751_v3 = vld [vmem:[#allocation5 + $0x278] sm:$0xf] }
  0xb3   :  { %v422_v55 = vpop.f32.mrf.mxu1 }
  0xb4   :  { %v205_v9 = vpop.f32.mrf.mxu3  ;;  %v2243_v14 = vpack.c.bf16 %v224_v8, %v220_v7  ;;  %v1464_v7 = vor.u32 %v1922_v63, %v1463_v62  ;;  %v2035_v62 = vld [vmem:[#allocation8 + $0xb0] sm:$0xff] }
  0xb5   :  { %v227_v12 = vmax.f32 %v205_v9, 0.0  ;;  %1080 = vmatpush.bf16.msrb.mxu0 %v1608_v4  ;;  %v1994_v4 = vld [vmem:[#allocation5 + $0x280] sm:$0xf0] }
  0xb6   :  { %961 = vmatmul.bf16.vlgmr.msrb.gmra.mxu3 %v2243_v14  ;;  %v1752_v9 = vor.u32 %v1994_v4, %v1751_v3  ;;  %v2034_v3 = vld [vmem:[#allocation8 + $0xa8] sm:$0xff]  ;;  %v2021_v4 = vld [vmem:[#allocation8 + $0x40] sm:$0xff] }
  0xb7   :  { %v2245_v18 = vpack.c.bf16 %v227_v12, %v223_v2  ;;  %1065 = vmatpush.bf16.msrb.mxu3 %v1524_v13  ;;  %v1982_v2 = vld [vmem:[#allocation5 + $0x220] sm:$0xf0]  ;;  %v1691_v12 = vld [vmem:[#allocation5 + $0x200] sm:$0xf]  ;;  %v1536_v13 = vor.u32 %v1940_v6, %v1535_v5 }
  0xb8   :  { %v1704_v8 = vor.u32 %v1982_v2, %v1703_v0  ;;  %v2022_v2 = vld [vmem:[#allocation8 + $0x48] sm:$0xff]  ;;  %v2033_v5 = vld [vmem:[#allocation8 + $0xa0] sm:$0xff] }
  0xb9   :  { %1003 = vmatmul.bf16.vlgmr.msrb.gmra.mxu2 %v2245_v18  ;;  %v189_v28 = vpop.f32.mrf.mxu2  ;;  %1081 = vmatpush.bf16.msrb.mxu0 %v1596_v19  ;;  %v1452_v19 = vor.u32 %v1919_v11, %v1451_v10  ;;  %v2032_v10 = vld [vmem:[#allocation8 + $0x98] sm:$0xff] }
  0xba   :  { %1107 = vmatpush.bf16.msrb.mxu2 %v1812_v15  ;;  %v222_v53 = vmax.f32 %v189_v28, 0.0  ;;  %v1979_v15 = vld [vmem:[#allocation5 + $0x208] sm:$0xf0]  ;;  %v1440_v28 = vor.u32 %v1916_v23, %v1439_v22 }
  0xbb   :  { %1066 = vmatpush.bf16.msrb.mxu3 %v1512_v24  ;;  %v1692_v20 = vor.u32 %v1979_v15, %v1691_v12  ;;  %v1679_v24 = vld [vmem:[#allocation5 + $0x1e8] sm:$0xf]  ;;  %v424_v0 = vpop.f32.mrf.mxu1 }
  0xbd   :  { %1082 = vmatpush.bf16.msrb.mxu0 %v1584_v29 }
  0xbe   :  { %1108 = vmatpush.bf16.msrb.mxu2 %v1800_v25  ;;  %v1976_v25 = vld [vmem:[#allocation5 + $0x1f0] sm:$0xf0] }
  0xbf   :  { %1067 = vmatpush.bf16.msrb.mxu3 %v1500_v34  ;;  %v1680_v29 = vor.u32 %v1976_v25, %v1679_v24  ;;  %v1655_v34 = vld [vmem:[#allocation5 + $0x1b8] sm:$0xf]  ;;  %v2030_v24 = vld [vmem:[#allocation8 + $0x88] sm:$0xff] }
  0xc0   :  { %1031 = vmatmul.bf16.vlgmr.msra.gmra.mxu0 %v2240_v61 }
  0xc1   :  { %v191_v48 = vpop.f32.mrf.mxu2  ;;  %1083 = vmatpush.bf16.msrb.mxu0 %v1572_v37  ;;  %v1967_v37 = vld [vmem:[#allocation5 + $0x1a8] sm:$0xf0] }
  0xc2   :  { %1109 = vmatpush.bf16.msrb.mxu2 %v1788_v45  ;;  %v226_v54 = vmax.f32 %v191_v48, 0.0  ;;  %v1970_v45 = vld [vmem:[#allocation5 + $0x1c0] sm:$0xf0]  ;;  %v2027_v48 = vld [vmem:[#allocation8 + $0x70] sm:$0xff] }
  0xc3   :  { %1068 = vmatpush.bf16.msrb.mxu3 %v1488_v42  ;;  %v1656_v35 = vor.u32 %v1970_v45, %v1655_v34  ;;  %v2019_v42 = vld [vmem:[#allocation8 + $0x30] sm:$0xff] }
  0xc4   :  { %v2250_v58 = vpack.c.bf16 %v226_v54, %v222_v53  ;;  %v2013_v53 = vld [vmem:[#allocation8] sm:$0xff] }
  0xc5   :  { %1084 = vmatpush.bf16.msrb.mxu0 %v1560_v49  ;;  %v2025_v54 = vld [vmem:[#allocation8 + $0x60] sm:$0xff] }
  0xc6   :  { %1110 = vmatpush.bf16.msrb.mxu2 %v1776_v43  ;;  %989 = vmatmul.bf16.vlgmr.msra.gmra.mxu1 %v2250_v58  ;;  %v408_v43 = vpop.f32.mrf.mxu0 }
  0xc7   :  { %1017 = vmatmul.bf16.vlgmr.msra.gmra.mxu3 %v2243_v14  ;;  %1093 = vmatpush.bf16.msra.mxu1 %v1716_v59 }
  0xc8   :  { %1069 = vmatpush.bf16.msrb.mxu3 %v1476_v57  ;;  %v2024_v57 = vld [vmem:[#allocation8 + $0x58] sm:$0xff] }
  0xc9   :  { %1059 = vmatmul.bf16.vlgmr.msra.gmra.mxu2 %v2245_v18  ;;  %1085 = vmatpush.bf16.msrb.mxu0 %v1548_v1  ;;  %v2260_v49 = vpop.f32.mrf.mxu2 }
  0xca   :  { %1111 = vmatpush.bf16.msrb.mxu2 %v1764_v60  ;;  %v2023_v60 = vld [vmem:[#allocation8 + $0x50] sm:$0xff] }
  0xcb   :  { %1094 = vmatpush.bf16.msra.mxu1 %v1704_v8 }
  0xcc   :  { %1070 = vmatpush.bf16.msrb.mxu3 %v1464_v7 }
  0xcd   :  { %1086 = vmatpush.bf16.msrb.mxu0 %v1536_v13 }
  0xce   :  { %1112 = vmatpush.bf16.msrb.mxu2 %v1752_v9  ;;  %v410_v52 = vpop.f32.mrf.mxu0 }
  0xcf   :  { %1095 = vmatpush.bf16.msra.mxu1 %v1692_v20 }
  0xd0   :  { %1071 = vmatpush.bf16.msrb.mxu3 %v1452_v19  ;;  %1087 = vmatmul.bf16.vlgmr.msrb.gmra.mxu0 %v2240_v61  ;;  %v1644_v61 = vor.u32 %v1967_v37, %v1643_v36 }
  0xd1   :  { %1346 = vmatpush.bf16.msra.mxu0 %v2028_v46  ;;  %v2262_v56 = vpop.f32.mrf.mxu2 }
  0xd2   :  { %1113 = vmatpush.bf16.msrb.mxu2 %v1740_v21 }
  0xd3   :  { %1096 = vmatpush.bf16.msra.mxu1 %v1680_v29  ;;  %v2029_v29 = vld [vmem:[#allocation8 + $0x80] sm:$0xff] }
  0xd4   :  { %1072 = vmatpush.bf16.msrb.mxu3 %v1440_v28 }
  0xd5   :  { %1347 = vmatpush.bf16.msra.mxu0 %v2027_v48 }
  0xd6   :  { %1114 = vmatpush.bf16.msrb.mxu2 %v1728_v30  ;;  %1045 = vmatmul.bf16.vlgmr.msrb.gmra.mxu1 %v2250_v58 }
  0xd7   :  { %1073 = vmatmul.bf16.vlgmr.msrb.gmra.mxu3 %v2243_v14  ;;  %1097 = vmatpush.bf16.msra.mxu1 %v1668_v33  ;;  %v2018_v14 = vld [vmem:[#allocation8 + $0x28] sm:$0xff] }
  0xd8   :  { %1332 = vmatpush.bf16.msra.mxu3 %v2020_v41 }
  0xd9   :  { %1115 = vmatmul.bf16.vlgmr.msrb.gmra.mxu2 %v2245_v18  ;;  %v2017_v18 = vld [vmem:[#allocation8 + $0x20] sm:$0xff]  ;;  %1348 = vmatpush.bf16.msra.mxu0 %v2026_v51 }
  0xdb   :  { %1098 = vmatpush.bf16.msra.mxu1 %v1656_v35 }
  0xdc   :  { %1333 = vmatpush.bf16.msra.mxu3 %v2019_v42 }
  0xdd   :  { %1349 = vmatpush.bf16.msra.mxu0 %v2025_v54 }
  0xdf   :  { %1099 = vmatpush.bf16.msra.mxu1 %v1644_v61 }
  0xe0   :  { %1334 = vmatpush.bf16.msra.mxu3 %v2018_v14 }
  0xe1   :  { %1350 = vmatpush.bf16.msra.mxu0 %v2024_v57 }
  0xe3   :  { %1100 = vmatpush.bf16.msra.mxu1 %v1632_v40 }
  0xe4   :  { %1335 = vmatpush.bf16.msra.mxu3 %v2017_v18 }
  0xe5   :  { %1351 = vmatpush.bf16.msra.mxu0 %v2023_v60 }
  0xe6   :  { %1101 = vmatmul.bf16.vlgmr.msra.gmra.mxu1 %v2250_v58  ;;  %v2036_v58 = vld [vmem:[#allocation8 + $0xb8] sm:$0xff] }
  0xe7   :  { %1360 = vmatpush.bf16.msrb.mxu1 %v2036_v58 }
  0xe8   :  { %1336 = vmatpush.bf16.msra.mxu3 %v2016_v44 }
  0xe9   :  { %1352 = vmatpush.bf16.msra.mxu0 %v2022_v2 }
  0xeb   :  { %1361 = vmatpush.bf16.msrb.mxu1 %v2035_v62 }
  0xec   :  { %1337 = vmatpush.bf16.msra.mxu3 %v2015_v47 }
  0xed   :  { %1353 = vmatpush.bf16.msra.mxu0 %v2021_v4  ;;  %v2048_v4 = vld [vmem:[#allocation2] ss:$0 sm:$0xff] }
  0xef   :  { %1362 = vmatpush.bf16.msrb.mxu1 %v2034_v3 }
  0xf0   :  { %1338 = vmatpush.bf16.msra.mxu3 %v2014_v50 }
  0xf3   :  { %1363 = vmatpush.bf16.msrb.mxu1 %v2033_v5 }
  0xf4   :  { %1339 = vmatpush.bf16.msra.mxu3 %v2013_v53 }
  0xf7   :  { %1364 = vmatpush.bf16.msrb.mxu1 %v2032_v10 }
  0xfb   :  { %1365 = vmatpush.bf16.msrb.mxu1 %v2031_v16 }
  0xff   :  { %1366 = vmatpush.bf16.msrb.mxu1 %v2030_v24 }
 0x103   :  { %1367 = vmatpush.bf16.msrb.mxu1 %v2029_v29 }
 0x12d   :  { %v976_v59 = vpop.f32.mrf.mxu0 }
 0x135   :  { %v978_v7 = vpop.f32.mrf.mxu0 }
 0x139   :  { %v962_v63 = vpop.f32.mrf.mxu3 }
 0x13a   :  { %v963_v8 = vadd.f32 %v962_v63, %v408_v43 }
 0x13c   :  { %v1004_v1 = vpop.f32.mrf.mxu2  ;;  %v977_v13 = vadd.f32 %v976_v59, %v963_v8 }
 0x13d   :  { %v1032_v21 = vpop.f32.mrf.mxu0 }
 0x141   :  { %v964_v6 = vpop.f32.mrf.mxu3 }
 0x142   :  { %v965_v12 = vadd.f32 %v964_v6, %v410_v52 }
 0x143   :  { %v990_v9 = vpop.f32.mrf.mxu1 }
 0x144   :  { %v1006_v11 = vpop.f32.mrf.mxu2  ;;  %v991_v15 = vadd.f32 %v990_v9, %v977_v13  ;;  %v979_v19 = vadd.f32 %v978_v7, %v965_v12 }
 0x145   :  { %v1034_v34 = vpop.f32.mrf.mxu0 }
 0x146   :  { %v1005_v22 = vadd.f32 %v1004_v1, %v991_v15 }
 0x148   :  { %v1131_v27 = vmax.f32 %v1005_v22, 0.0 }
 0x14a   :  { %v1018_v17 = vpop.f32.mrf.mxu3 }
 0x14b   :  { %v992_v20 = vpop.f32.mrf.mxu1  ;;  %v1019_v31 = vadd.f32 %v1018_v17, %v422_v55 }
 0x14c   :  { %v993_v23 = vadd.f32 %v992_v20, %v979_v19  ;;  %v1060_v26 = vpop.f32.mrf.mxu2 }
 0x14d   :  { %v1033_v35 = vadd.f32 %v1032_v21, %v1019_v31  ;;  %v1088_v14 = vpop.f32.mrf.mxu0 }
 0x14e   :  { %v1007_v25 = vadd.f32 %v1006_v11, %v993_v23 }
 0x150   :  { %v1134_v28 = vmax.f32 %v1007_v25, 0.0 }
 0x152   :  { %v1020_v30 = vpop.f32.mrf.mxu3  ;;  %v1137_v32 = vpack.c.bf16 %v1134_v28, %v1131_v27 }
 0x153   :  { %v1046_v33 = vpop.f32.mrf.mxu1  ;;  %v1021_v45 = vadd.f32 %v1020_v30, %v424_v0 }
 0x154   :  { %1340 = vmatmul.bf16.vlgmr.msra.gmra.mxu3 %v1137_v32  ;;  %v1047_v36 = vadd.f32 %v1046_v33, %v1033_v35  ;;  %v1062_v37 = vpop.f32.mrf.mxu2 }
 0x155   :  { %v1035_v38 = vadd.f32 %v1034_v34, %v1021_v45  ;;  %v1090_v54 = vpop.f32.mrf.mxu0 }
 0x156   :  { %v1061_v40 = vadd.f32 %v1060_v26, %v1047_v36 }
 0x158   :  { %v1132_v18 = vmax.f32 %v1061_v40, 0.0 }
 0x15a   :  { %v1074_v61 = vpop.f32.mrf.mxu3 }
 0x15b   :  { %v1048_v39 = vpop.f32.mrf.mxu1  ;;  %v1075_v46 = vadd.f32 %v1074_v61, %v2260_v49 }
 0x15c   :  { %v1049_v41 = vadd.f32 %v1048_v39, %v1035_v38  ;;  %v1116_v47 = vpop.f32.mrf.mxu2 }
 0x15d   :  { %v1089_v52 = vadd.f32 %v1088_v14, %v1075_v46 }
 0x15e   :  { %v1063_v42 = vadd.f32 %v1062_v37, %v1049_v41 }
 0x160   :  { %v1135_v43 = vmax.f32 %v1063_v42, 0.0 }
 0x162   :  { %v1138_v44 = vpack.c.bf16 %v1135_v43, %v1132_v18  ;;  %v1076_v48 = vpop.f32.mrf.mxu3 }
 0x163   :  { %v1102_v50 = vpop.f32.mrf.mxu1  ;;  %v1077_v51 = vadd.f32 %v1076_v48, %v2262_v56 }
 0x164   :  { %1354 = vmatmul.bf16.vlgmr.msra.gmra.mxu0 %v1138_v44  ;;  %v1103_v53 = vadd.f32 %v1102_v50, %v1089_v52  ;;  %v1118_v60 = vpop.f32.mrf.mxu2 }
 0x165   :  { %v1091_v55 = vadd.f32 %v1090_v54, %v1077_v51 }
 0x166   :  { %v1117_v58 = vadd.f32 %v1116_v47, %v1103_v53 }
 0x168   :  { %v1133_v63 = vmax.f32 %v1117_v58, 0.0 }
 0x16b   :  { %v1104_v57 = vpop.f32.mrf.mxu1 }
 0x16c   :  { %v1105_v59 = vadd.f32 %v1104_v57, %v1091_v55 }
 0x16e   :  { %v1119_v62 = vadd.f32 %v1118_v60, %v1105_v59 }
 0x170   :  { %v1136_v0 = vmax.f32 %v1119_v62, 0.0 }
 0x172   :  { %v1139_v1 = vpack.c.bf16 %v1136_v0, %v1133_v63 }
 0x174   :  { %1368 = vmatmul.bf16.vlgmr.msrb.gmra.mxu1 %v1139_v1 }
 0x1d7   :  { %v1341_v2 = vpop.f32.mrf.mxu3 }
 0x1df   :  { %v1343_v8 = vpop.f32.mrf.mxu3 }
 0x1e1   :  { %v1355_v49 = vpop.f32.mrf.mxu0 }
 0x1e2   :  { %v1356_v3 = vadd.f32 %v1355_v49, %v1341_v2 }
 0x1e9   :  { %v1357_v7 = vpop.f32.mrf.mxu0 }
 0x1ea   :  { %v1358_v9 = vadd.f32 %v1357_v7, %v1343_v8 }
 0x1f1   :  { %v1369_v5 = vpop.f32.mrf.mxu1 }
 0x1f2   :  { %v1370_v6 = vadd.f32 %v1369_v5, %v1356_v3 }
 0x1f4   :  { %v1378_v56 = vadd.f32 %v2048_v4, %v1370_v6 }
 0x1f6   :  { %1381 = vst.msk [vmem:[%s2278_s6] sm:$0xff] %vm1380_vm3, %v1378_v56 }
 0x1f9   :  { %v1371_v10 = vpop.f32.mrf.mxu1 }
 0x1fa   :  { %v1372_v11 = vadd.f32 %v1371_v10, %v1358_v9 }
 0x1fc   :  { %v1379_v12 = vadd.f32 %v2048_v4, %v1372_v11 }
 0x1fe   :  { %1382 = vst.msk [vmem:[%s2278_s6 + $0x8] sm:$0xff] %vm1380_vm3, %v1379_v12 }
 0x1ff   :  { %1387 = vsyncpa [#allocation4], 1 }
 0x200   :  { %1388 = vsyncpa [#allocation6], 1 }
 0x201   :  { %1389 = vsyncpa [#allocation9], 1 }

</bundles_post_ra>
